<compile_context>
chip_gen: v7x
topology: tpu7x:2x2x1
jax: 0.10.0
libtpu: 0.0.40
codegen_flags: <defaults>
</compile_context>

<pallas_src>
import functools

import jax
import jax.numpy as jnp
from jax.experimental import pallas as pl
from jax.experimental.pallas import tpu as pltpu

# Layer dimensions (from the nn.Linear shapes in __init__).
DIMS = [27, 128, 256, 128, 64, 9]


def _round_up(x, m):
    return ((x + m - 1) // m) * m


def _cdiv(a, b):
    return (a + b - 1) // b


def mlp_kernel(x_ref,
               w1_ref, b1_ref,
               w2_ref, b2_ref,
               w3_ref, b3_ref,
               w4_ref, b4_ref,
               w5_ref, b5_ref,
               o_ref):
    # x arrives fp32 from HBM; cast to bf16 in-kernel (VALU slot has slack) so
    # the wrapper never spends an extra HBM pass on the cast.
    x = x_ref[...].astype(jnp.bfloat16)

    # bf16 operands on the MXU, fp32 accumulation, fp32 bias-add + ReLU,
    # re-cast activations to bf16 before the next dot.
    h = jnp.dot(x, w1_ref[...], preferred_element_type=jnp.float32)
    h = jnp.maximum(h + b1_ref[...], 0.0)

    h = jnp.dot(h.astype(jnp.bfloat16), w2_ref[...],
                preferred_element_type=jnp.float32)
    h = jnp.maximum(h + b2_ref[...], 0.0)

    h = jnp.dot(h.astype(jnp.bfloat16), w3_ref[...],
                preferred_element_type=jnp.float32)
    h = jnp.maximum(h + b3_ref[...], 0.0)

    h = jnp.dot(h.astype(jnp.bfloat16), w4_ref[...],
                preferred_element_type=jnp.float32)
    h = jnp.maximum(h + b4_ref[...], 0.0)

    # Output layer: matmul + bias, no activation. Native 9-wide fp32 store
    # (tiny writeback; the few masked lane-stores are cheaper than padding the
    # output to 128 fp32 lanes and slicing it afterwards).
    out = jnp.dot(h.astype(jnp.bfloat16), w5_ref[...],
                  preferred_element_type=jnp.float32)
    o_ref[...] = (out + b5_ref[...]).astype(o_ref.dtype)


@functools.partial(jax.jit, static_argnames=("block_b",))
def _mlp_forward_padded(x_pad, flat_params, block_b):
    """x_pad: (B_pad, 27) fp32, B_pad % block_b == 0. flat_params: [w1,b1,...,w5,b5]."""
    B_pad = x_pad.shape[0]
    grid = (B_pad // block_b,)

    # Batch-tiled input; weights/biases are full blocks with constant
    # index_maps so they stay VMEM-resident across grid steps.
    in_specs = [pl.BlockSpec((block_b, DIMS[0]), lambda i: (i, 0))]
    for p in flat_params:
        in_specs.append(pl.BlockSpec(p.shape, lambda i: (0, 0)))

    # Native 9-wide fp32 output block (last dim equals full array dim).
    out_spec = pl.BlockSpec((block_b, DIMS[-1]), lambda i: (i, 0))

    return pl.pallas_call(
        mlp_kernel,
        out_shape=jax.ShapeDtypeStruct((B_pad, DIMS[-1]), jnp.float32),
        grid_spec=pltpu.PrefetchScalarGridSpec(
            num_scalar_prefetch=0,
            grid=grid,
            in_specs=in_specs,
            out_specs=out_spec,
        ),
        compiler_params=pltpu.CompilerParams(
            dimension_semantics=("parallel",)),
    )(x_pad, *flat_params)


def prepare_params(params):
    """Cast weights to bf16 (MXU dtype), keep biases fp32, flatten to [w1,b1,...]."""
    flat = []
    for w, b in params:
        flat.append(w.astype(jnp.bfloat16))
        flat.append(b.astype(jnp.float32))
    return flat


def _choose_tiling(B, block_b):
    """Adaptive batch tiling: minimal padding, >=4 grid steps for large batches.

    Returns (eff_block, B_pad) with eff_block a multiple of 16 and
    B_pad % eff_block == 0, B_pad >= B.
    """
    B_align = _round_up(B, 16)
    n_steps = _cdiv(B_align, block_b)
    # For large batches, ensure >= 4 grid steps so both v7x TensorCores get
    # >= 2 pipelined steps each under dimension_semantics=("parallel",).
    if B_align >= 4 * 128:
        n_steps = max(n_steps, 4)
    eff_block = _round_up(_cdiv(B_align, n_steps), 16)
    return eff_block, n_steps * eff_block


def mlp_forward(x, params, block_b=512):
    """x: (B, 27) float32. params: list of (W_t (in,out), b (1,out)) fp32 arrays."""
    B = x.shape[0]
    flat = prepare_params(params)

    eff_block, B_pad = _choose_tiling(B, block_b)
    x_pad = x if B_pad == B else jnp.pad(x, ((0, B_pad - B), (0, 0)))
    x_pad = x_pad.astype(jnp.float32)  # no-op if already fp32; cast to bf16 happens in-kernel

    out = _mlp_forward_padded(x_pad, flat, block_b=eff_block)
    # Only a row slice when the batch was padded; no lane slicing needed.
    return out if B_pad == B else out[:B]


def init_params(key):
    """Deterministic init mimicking PyTorch nn.Linear default (uniform +-1/sqrt(fan_in))."""
    params = []
    for i in range(len(DIMS) - 1):
        fan_in, fan_out = DIMS[i], DIMS[i + 1]
        key, kw, kb = jax.random.split(key, 3)
        bound = 1.0 / (fan_in ** 0.5)
        # Stored transposed: (in, out) so the kernel does x @ W + b.
        w_t = jax.random.uniform(kw, (fan_in, fan_out), jnp.float32, -bound, bound)
        b = jax.random.uniform(kb, (1, fan_out), jnp.float32, -bound, bound)
        params.append((w_t, b))
    return params


def mlp_reference_f32(x, params):
    """Pure fp32 reference (PyTorch semantics)."""
    h = x
    for i, (w, b) in enumerate(params):
        h = h @ w + b
        if i < len(params) - 1:
            h = jnp.maximum(h, 0.0)
    return h


def mlp_reference_bf16(x, params):
    """Reference mirroring the kernel's bf16-operand / fp32-accumulate math."""
    h = x.astype(jnp.bfloat16)
    for i, (w, b) in enumerate(params):
        h = jnp.dot(h, w.astype(jnp.bfloat16),
                    preferred_element_type=jnp.float32) + b
        if i < len(params) - 1:
            h = jnp.maximum(h, 0.0).astype(jnp.bfloat16)
    return h


def _check(x, params):
    out = mlp_forward(x, params)
    out = jax.block_until_ready(out)
    assert out.shape == (x.shape[0], DIMS[-1]), out.shape
    assert out.dtype == jnp.float32, out.dtype

    # Tight check vs a reference using the same bf16-operand math as the kernel.
    ref_bf16 = mlp_reference_bf16(x, params)
    assert jnp.allclose(out, ref_bf16, atol=2e-3, rtol=2e-3), "mismatch vs bf16 reference"

    # Loose sanity check vs the pure fp32 PyTorch-equivalent reference.
    ref_f32 = mlp_reference_f32(x, params)
    assert jnp.allclose(out, ref_f32, atol=5e-2, rtol=5e-2), "mismatch vs fp32 reference"
    return out


if __name__ == "__main__":
    key = jax.random.PRNGKey(0)
    kx, kx2, kp = jax.random.split(key, 3)
    params = init_params(kp)

    # Small demo batch: 16 rows -> single grid step, no padding, no slicing.
    x = jax.random.normal(kx, (16, DIMS[0]), dtype=jnp.float32)
    _check(x, params)

    # Non-multiple batch: exercises the adaptive pad (40 -> 48 rows) + row slice.
    x2 = jax.random.normal(kx2, (40, DIMS[0]), dtype=jnp.float32)
    _check(x2, params)

    print("KERNEL_OK")
</pallas_src>

<mosaic_0001>
module attributes {stable_mosaic.version = 11 : i64} {
  func.func @mlp_kernel(%arg0: i32, %arg1: memref<16x27xf32, #tpu.memory_space<vmem>>, %arg2: memref<27x128xbf16, #tpu.memory_space<vmem>>, %arg3: memref<1x128xf32, #tpu.memory_space<vmem>>, %arg4: memref<128x256xbf16, #tpu.memory_space<vmem>>, %arg5: memref<1x256xf32, #tpu.memory_space<vmem>>, %arg6: memref<256x128xbf16, #tpu.memory_space<vmem>>, %arg7: memref<1x128xf32, #tpu.memory_space<vmem>>, %arg8: memref<128x64xbf16, #tpu.memory_space<vmem>>, %arg9: memref<1x64xf32, #tpu.memory_space<vmem>>, %arg10: memref<64x9xbf16, #tpu.memory_space<vmem>>, %arg11: memref<1x9xf32, #tpu.memory_space<vmem>>, %arg12: memref<16x9xf32, #tpu.memory_space<vmem>>) attributes {dimension_semantics = [#tpu.dimension_semantics<parallel>], iteration_bounds = array<i64: 1>, scalar_prefetch = 0 : i64, scratch_operands = 0 : i64, tpu.core_type = #tpu.core_type<tc>, window_params = [{transform_indices = @transform_0, window_bounds = array<i64: 16, 27>}, {pipeline_mode = #tpu.pipeline_mode<synchronous>, transform_indices = @transform_1, window_bounds = array<i64: 27, 128>}, {pipeline_mode = #tpu.pipeline_mode<synchronous>, transform_indices = @transform_2, window_bounds = array<i64: 1, 128>}, {pipeline_mode = #tpu.pipeline_mode<synchronous>, transform_indices = @transform_3, window_bounds = array<i64: 128, 256>}, {pipeline_mode = #tpu.pipeline_mode<synchronous>, transform_indices = @transform_4, window_bounds = array<i64: 1, 256>}, {pipeline_mode = #tpu.pipeline_mode<synchronous>, transform_indices = @transform_5, window_bounds = array<i64: 256, 128>}, {pipeline_mode = #tpu.pipeline_mode<synchronous>, transform_indices = @transform_6, window_bounds = array<i64: 1, 128>}, {pipeline_mode = #tpu.pipeline_mode<synchronous>, transform_indices = @transform_7, window_bounds = array<i64: 128, 64>}, {pipeline_mode = #tpu.pipeline_mode<synchronous>, transform_indices = @transform_8, window_bounds = array<i64: 1, 64>}, {pipeline_mode = #tpu.pipeline_mode<synchronous>, transform_indices = @transform_9, window_bounds = array<i64: 64, 9>}, {pipeline_mode = #tpu.pipeline_mode<synchronous>, transform_indices = @transform_10, window_bounds = array<i64: 1, 9>}, {transform_indices = @transform_11, window_bounds = array<i64: 16, 9>}]} {
    %c0 = arith.constant 0 : index
    %c0_0 = arith.constant 0 : index
    %0 = vector.load %arg1[%c0, %c0_0] : memref<16x27xf32, #tpu.memory_space<vmem>>, vector<16x27xf32>
    %1 = arith.truncf %0 : vector<16x27xf32> to vector<16x27xbf16>
    %c0_1 = arith.constant 0 : index
    %c0_2 = arith.constant 0 : index
    %2 = vector.load %arg2[%c0_1, %c0_2] : memref<27x128xbf16, #tpu.memory_space<vmem>>, vector<27x128xbf16>
    %cst = arith.constant dense<0.000000e+00> : vector<16x128xf32>
    %3 = tpu.matmul %1, %2, %cst {dimension_numbers = #tpu.dot_dimension_numbers<[1], [0], [0], [1], [0, 0, 1, 1], [], []>} : vector<16x27xbf16>, vector<27x128xbf16>, vector<16x128xf32> -> vector<16x128xf32>
    %c0_3 = arith.constant 0 : index
    %c0_4 = arith.constant 0 : index
    %4 = vector.load %arg3[%c0_3, %c0_4] : memref<1x128xf32, #tpu.memory_space<vmem>>, vector<1x128xf32>
    %5 = vector.broadcast %4 : vector<1x128xf32> to vector<16x128xf32>
    %6 = arith.addf %3, %5 : vector<16x128xf32>
    %cst_5 = arith.constant 0.000000e+00 : f32
    %7 = vector.broadcast %cst_5 : f32 to vector<16x128xf32>
    %8 = arith.maximumf %6, %7 : vector<16x128xf32>
    %9 = arith.truncf %8 : vector<16x128xf32> to vector<16x128xbf16>
    %c0_6 = arith.constant 0 : index
    %c0_7 = arith.constant 0 : index
    %10 = vector.load %arg4[%c0_6, %c0_7] : memref<128x256xbf16, #tpu.memory_space<vmem>>, vector<128x256xbf16>
    %cst_8 = arith.constant dense<0.000000e+00> : vector<16x256xf32>
    %11 = tpu.matmul %9, %10, %cst_8 {dimension_numbers = #tpu.dot_dimension_numbers<[1], [0], [0], [1], [0, 0, 1, 1], [], []>} : vector<16x128xbf16>, vector<128x256xbf16>, vector<16x256xf32> -> vector<16x256xf32>
    %c0_9 = arith.constant 0 : index
    %c0_10 = arith.constant 0 : index
    %12 = vector.load %arg5[%c0_9, %c0_10] : memref<1x256xf32, #tpu.memory_space<vmem>>, vector<1x256xf32>
    %13 = vector.broadcast %12 : vector<1x256xf32> to vector<16x256xf32>
    %14 = arith.addf %11, %13 : vector<16x256xf32>
    %cst_11 = arith.constant 0.000000e+00 : f32
    %15 = vector.broadcast %cst_11 : f32 to vector<16x256xf32>
    %16 = arith.maximumf %14, %15 : vector<16x256xf32>
    %17 = arith.truncf %16 : vector<16x256xf32> to vector<16x256xbf16>
    %c0_12 = arith.constant 0 : index
    %c0_13 = arith.constant 0 : index
    %18 = vector.load %arg6[%c0_12, %c0_13] : memref<256x128xbf16, #tpu.memory_space<vmem>>, vector<256x128xbf16>
    %cst_14 = arith.constant dense<0.000000e+00> : vector<16x128xf32>
    %19 = tpu.matmul %17, %18, %cst_14 {dimension_numbers = #tpu.dot_dimension_numbers<[1], [0], [0], [1], [0, 0, 1, 1], [], []>} : vector<16x256xbf16>, vector<256x128xbf16>, vector<16x128xf32> -> vector<16x128xf32>
    %c0_15 = arith.constant 0 : index
    %c0_16 = arith.constant 0 : index
    %20 = vector.load %arg7[%c0_15, %c0_16] : memref<1x128xf32, #tpu.memory_space<vmem>>, vector<1x128xf32>
    %21 = vector.broadcast %20 : vector<1x128xf32> to vector<16x128xf32>
    %22 = arith.addf %19, %21 : vector<16x128xf32>
    %cst_17 = arith.constant 0.000000e+00 : f32
    %23 = vector.broadcast %cst_17 : f32 to vector<16x128xf32>
    %24 = arith.maximumf %22, %23 : vector<16x128xf32>
    %25 = arith.truncf %24 : vector<16x128xf32> to vector<16x128xbf16>
    %c0_18 = arith.constant 0 : index
    %c0_19 = arith.constant 0 : index
    %26 = vector.load %arg8[%c0_18, %c0_19] : memref<128x64xbf16, #tpu.memory_space<vmem>>, vector<128x64xbf16>
    %cst_20 = arith.constant dense<0.000000e+00> : vector<16x64xf32>
    %27 = tpu.matmul %25, %26, %cst_20 {dimension_numbers = #tpu.dot_dimension_numbers<[1], [0], [0], [1], [0, 0, 1, 1], [], []>} : vector<16x128xbf16>, vector<128x64xbf16>, vector<16x64xf32> -> vector<16x64xf32>
    %c0_21 = arith.constant 0 : index
    %c0_22 = arith.constant 0 : index
    %28 = vector.load %arg9[%c0_21, %c0_22] : memref<1x64xf32, #tpu.memory_space<vmem>>, vector<1x64xf32>
    %29 = vector.broadcast %28 : vector<1x64xf32> to vector<16x64xf32>
    %30 = arith.addf %27, %29 : vector<16x64xf32>
    %cst_23 = arith.constant 0.000000e+00 : f32
    %31 = vector.broadcast %cst_23 : f32 to vector<16x64xf32>
    %32 = arith.maximumf %30, %31 : vector<16x64xf32>
    %33 = arith.truncf %32 : vector<16x64xf32> to vector<16x64xbf16>
    %c0_24 = arith.constant 0 : index
    %c0_25 = arith.constant 0 : index
    %34 = vector.load %arg10[%c0_24, %c0_25] : memref<64x9xbf16, #tpu.memory_space<vmem>>, vector<64x9xbf16>
    %cst_26 = arith.constant dense<0.000000e+00> : vector<16x9xf32>
    %35 = tpu.matmul %33, %34, %cst_26 {dimension_numbers = #tpu.dot_dimension_numbers<[1], [0], [0], [1], [0, 0, 1, 1], [], []>} : vector<16x64xbf16>, vector<64x9xbf16>, vector<16x9xf32> -> vector<16x9xf32>
    %c0_27 = arith.constant 0 : index
    %c0_28 = arith.constant 0 : index
    %36 = vector.load %arg11[%c0_27, %c0_28] : memref<1x9xf32, #tpu.memory_space<vmem>>, vector<1x9xf32>
    %37 = vector.broadcast %36 : vector<1x9xf32> to vector<16x9xf32>
    %38 = arith.addf %35, %37 : vector<16x9xf32>
    %c0_29 = arith.constant 0 : index
    %c0_30 = arith.constant 0 : index
    %39 = vector.load %arg12[%c0_29, %c0_30] : memref<16x9xf32, #tpu.memory_space<vmem>>, vector<16x9xf32>
    tpu.vector_store %arg12[%c0_29, %c0_30], %38 {strides = array<i32>} : memref<16x9xf32, #tpu.memory_space<vmem>>, vector<16x9xf32>,
    return
  }
  func.func @transform_0(%arg0: i32) -> (i32, i32) {
    %c0_i32 = arith.constant 0 : i32
    %c0_i32_0 = arith.constant 0 : i32
    return %arg0, %c0_i32 : i32, i32
  }
  func.func @transform_1(%arg0: i32) -> (i32, i32) {
    %c0_i32 = arith.constant 0 : i32
    %c0_i32_0 = arith.constant 0 : i32
    %c0_i32_1 = arith.constant 0 : i32
    return %c0_i32, %c0_i32_0 : i32, i32
  }
  func.func @transform_2(%arg0: i32) -> (i32, i32) {
    %c0_i32 = arith.constant 0 : i32
    %c0_i32_0 = arith.constant 0 : i32
    %c0_i32_1 = arith.constant 0 : i32
    return %c0_i32, %c0_i32_0 : i32, i32
  }
  func.func @transform_3(%arg0: i32) -> (i32, i32) {
    %c0_i32 = arith.constant 0 : i32
    %c0_i32_0 = arith.constant 0 : i32
    %c0_i32_1 = arith.constant 0 : i32
    return %c0_i32, %c0_i32_0 : i32, i32
  }
  func.func @transform_4(%arg0: i32) -> (i32, i32) {
    %c0_i32 = arith.constant 0 : i32
    %c0_i32_0 = arith.constant 0 : i32
    %c0_i32_1 = arith.constant 0 : i32
    return %c0_i32, %c0_i32_0 : i32, i32
  }
  func.func @transform_5(%arg0: i32) -> (i32, i32) {
    %c0_i32 = arith.constant 0 : i32
    %c0_i32_0 = arith.constant 0 : i32
    %c0_i32_1 = arith.constant 0 : i32
    return %c0_i32, %c0_i32_0 : i32, i32
  }
  func.func @transform_6(%arg0: i32) -> (i32, i32) {
    %c0_i32 = arith.constant 0 : i32
    %c0_i32_0 = arith.constant 0 : i32
    %c0_i32_1 = arith.constant 0 : i32
    return %c0_i32, %c0_i32_0 : i32, i32
  }
  func.func @transform_7(%arg0: i32) -> (i32, i32) {
    %c0_i32 = arith.constant 0 : i32
    %c0_i32_0 = arith.constant 0 : i32
    %c0_i32_1 = arith.constant 0 : i32
    return %c0_i32, %c0_i32_0 : i32, i32
  }
  func.func @transform_8(%arg0: i32) -> (i32, i32) {
    %c0_i32 = arith.constant 0 : i32
    %c0_i32_0 = arith.constant 0 : i32
    %c0_i32_1 = arith.constant 0 : i32
    return %c0_i32, %c0_i32_0 : i32, i32
  }
  func.func @transform_9(%arg0: i32) -> (i32, i32) {
    %c0_i32 = arith.constant 0 : i32
    %c0_i32_0 = arith.constant 0 : i32
    %c0_i32_1 = arith.constant 0 : i32
    return %c0_i32, %c0_i32_0 : i32, i32
  }
  func.func @transform_10(%arg0: i32) -> (i32, i32) {
    %c0_i32 = arith.constant 0 : i32
    %c0_i32_0 = arith.constant 0 : i32
    %c0_i32_1 = arith.constant 0 : i32
    return %c0_i32, %c0_i32_0 : i32, i32
  }
  func.func @transform_11(%arg0: i32) -> (i32, i32) {
    %c0_i32 = arith.constant 0 : i32
    %c0_i32_0 = arith.constant 0 : i32
    return %arg0, %c0_i32 : i32, i32
  }
}

</mosaic_0001>

<bundles_post_ra>
// kernel: _mlp_forward_padded.1
= control target key start
LH: loop header
LB: loop body
LE: loop exit
PB: predicated region body
PF: predicated region fallthrough
CT: control target
= control target key end

     0   :  { %16 = vsyncpa [#allocation3], 0  ;;  %s1393_s0 = inlined_call_operand.hbm [shape: f32[16,27], index: 0, kind: input, shape index: {}]   ;;  %s1394_s1 = inlined_call_operand.hbm [shape: bf16[27,128], index: 1, kind: input, shape index: {}]   ;;  %s1395_s2 = inlined_call_operand.hbm [shape: f32[1,128], index: 2, kind: input, shape index: {}]   ;;  %s1396_s3 = inlined_call_operand.vmem [shape: bf16[128,256], index: 3, kind: input, shape index: {}]   ;;  %s1397_s4 = inlined_call_operand.vmem [shape: f32[1,256], index: 4, kind: input, shape index: {}]   ;;  %s1398_s5 = inlined_call_operand.hbm [shape: bf16[256,128], index: 5, kind: input, shape index: {}]   ;;  %s1399_s6 = inlined_call_operand.hbm [shape: f32[1,128], index: 6, kind: input, shape index: {}]   ;;  %s1400_s7 = inlined_call_operand.vmem [shape: bf16[128,64], index: 7, kind: input, shape index: {}]   ;;  %s1401_s8 = inlined_call_operand.hbm [shape: f32[1,64], index: 8, kind: input, shape index: {}]   ;;  %s1402_s9 = inlined_call_operand.vmem [shape: bf16[64,9], index: 9, kind: input, shape index: {}]   ;;  %s1403_s10 = inlined_call_operand.vmem [shape: f32[1,9], index: 10, kind: input, shape index: {}]   ;;  %s1404_s11 = inlined_call_operand.hbm [shape: f32[16,9], index: 11, kind: output, shape index: {}]  }
   0x1   :  { %17 = vsyncpa [#allocation6], 0 }
   0x2   :  { %18 = vsyncpa [#allocation9], 0 }
   0x3   :  { %19 = vsyncpa [#allocation12], 0 }
   0x4   :  { %20 = vsyncpa [#allocation4], 0  ;;  %s1118_s17 = smov [#allocation5]   ;;  %s954_s21 = scalar_lea.hbm %s1394_s1, 256 }
   0x5   :  { %s38_s18 = sshll.u32 %s1118_s17, 4  ;;  %p955_p0 = scmp.ne.s32.totalorder %s1394_s1, %s954_s21  ;;  %s39_s18 = int_to_ptr.vmem [resolvable:$true] %s38_s18 }
   0x6   :  { %p958_p1 = scmp.lt.u32.totalorder %s954_s21, %s1394_s1 }
   0x8   :  { %p960_p2 = pnand %p958_p1, %p955_p0 }
   0xa   :  { %963 = shalt.err (!%p960_p2)
}
   0xb   :  { %s964_s26 = scalar_lea.vmem %s39_s18, 256  ;;  %p969_p4 = scmp.lt.s32.totalorder %s39_s18, %s39_s18 }
   0xc   :  { %p965_p3 = scmp.ne.s32.totalorder %s39_s18, %s964_s26  ;;  %p970_p5 = scmp.lt.s32.totalorder %s964_s26, %s964_s26 }
   0xe   :  { %p971_p6 = por %p970_p5, %p969_p4 }
  0x10   :  { %p972_p7 = pnand %p971_p6, %p965_p3 }
  0x12   :  { %975 = shalt.err (!%p972_p7)
}
  0x13   :  { %s1119_s27 = smov 64   ;;  %s1120_s28 = smov 4  }
  0x14   :  { %44 = dma.hbm_to_vmem [thread:$0]  %s1394_s1, 256, %s39_s18, [#allocation6], %s1119_s27, %s1119_s27, %s1120_s28  }
  0x15   :  { %s1121_s12 = smov [#allocation8]   ;;  %s1122_s14 = smov [#allocation2]  }
  0x16   :  { %s64_s13 = sshll.u32 %s1121_s12, 4  ;;  %s26_s15 = sshll.u32 %s1122_s14, 4  ;;  %s65_s13 = int_to_ptr.vmem [resolvable:$true] %s64_s13  ;;  %s27_s15 = int_to_ptr.vmem [resolvable:$true] %s26_s15 }
  0x17   :  { %s976_s19 = scalar_lea.hbm %s1398_s5, 2048 }
  0x18   :  { %p977_p8 = scmp.ne.s32.totalorder %s1398_s5, %s976_s19  ;;  %p980_p9 = scmp.lt.u32.totalorder %s976_s19, %s1398_s5 }
  0x1a   :  { %p982_p10 = pnand %p980_p9, %p977_p8 }
  0x1c   :  { %985 = shalt.err (!%p982_p10)
}
  0x1d   :  { %s986_s1 = scalar_lea.vmem %s65_s13, 2048  ;;  %p991_p12 = scmp.lt.s32.totalorder %s65_s13, %s65_s13 }
  0x1e   :  { %p987_p11 = scmp.ne.s32.totalorder %s65_s13, %s986_s1  ;;  %p992_p13 = scmp.lt.s32.totalorder %s986_s1, %s986_s1 }
  0x20   :  { %p993_p0 = por %p992_p13, %p991_p12 }
  0x22   :  { %p994_p1 = pnand %p993_p0, %p987_p11 }
  0x24   :  { %997 = shalt.err (!%p994_p1)
}
  0x25   :  { %70 = dma.hbm_to_vmem [thread:$0]  %s1398_s5, 2048, %s65_s13, [#allocation9], %s1119_s27, %s1119_s27, %s1120_s28  }
  0x26   :  { %s998_s29 = scalar_lea.hbm %s1393_s0, 256 }
  0x27   :  { %p999_p2 = scmp.ne.s32.totalorder %s1393_s0, %s998_s29  ;;  %p1002_p3 = scmp.lt.u32.totalorder %s998_s29, %s1393_s0 }
  0x29   :  { %p1004_p4 = pnand %p1002_p3, %p999_p2 }
  0x2b   :  { %1007 = shalt.err (!%p1004_p4)
}
  0x2c   :  { %s1008_s17 = scalar_lea.vmem %s27_s15, 256  ;;  %p1013_p6 = scmp.lt.s32.totalorder %s27_s15, %s27_s15 }
  0x2d   :  { %p1009_p5 = scmp.ne.s32.totalorder %s27_s15, %s1008_s17  ;;  %p1014_p7 = scmp.lt.s32.totalorder %s1008_s17, %s1008_s17 }
  0x2f   :  { %p1015_p8 = por %p1014_p7, %p1013_p6 }
  0x31   :  { %p1016_p9 = pnand %p1015_p8, %p1009_p5 }
  0x33   :  { %1019 = shalt.err (!%p1016_p9)
}
  0x34   :  { %s1123_s5 = smov 128   ;;  %s1124_s27 = smov 8  }
  0x35   :  { %32 = dma.hbm_to_vmem [thread:$0]  %s1393_s0, 256, %s27_s15, [#allocation3], %s1123_s5, %s1123_s5, %s1124_s27  }
  0x36   :  { %s1125_s19 = smov [#allocation7]   ;;  %s1126_s21 = smov [#allocation10]  }
  0x37   :  { %s51_s20 = sshll.u32 %s1125_s19, 4  ;;  %s77_s22 = sshll.u32 %s1126_s21, 4  ;;  %s52_s20 = int_to_ptr.vmem [resolvable:$true] %s51_s20  ;;  %s78_s22 = int_to_ptr.vmem [resolvable:$true] %s77_s22 }
  0x38   :  { %s1020_s18 = scalar_lea.hbm %s1395_s2, 16 }
  0x39   :  { %p1021_p10 = scmp.ne.s32.totalorder %s1395_s2, %s1020_s18  ;;  %p1024_p11 = scmp.lt.u32.totalorder %s1020_s18, %s1395_s2 }
  0x3b   :  { %p1026_p12 = pnand %p1024_p11, %p1021_p10 }
  0x3d   :  { %1029 = shalt.err (!%p1026_p12)
}
  0x3e   :  { %s1030_s0 = scalar_lea.vmem %s52_s20, 16  ;;  %s1034_s15 = scalar_lea.vmem %s52_s20, 32 }
  0x3f   :  { %p1031_p13 = scmp.ne.s32.totalorder %s52_s20, %s1030_s0  ;;  %p1035_p0 = scmp.lt.s32.totalorder %s52_s20, %s52_s20 }
  0x40   :  { %p1036_p1 = scmp.lt.s32.totalorder %s1034_s15, %s1030_s0 }
  0x42   :  { %p1037_p2 = por %p1036_p1, %p1035_p0 }
  0x44   :  { %p1038_p3 = pnand %p1037_p2, %p1031_p13 }
  0x46   :  { %1041 = shalt.err (!%p1038_p3)
}
  0x47   :  { %54 = dma.hbm_to_vmem [thread:$0]  %s1395_s2, 16, %s52_s20, [#allocation6]  }
  0x48   :  { %s1042_s17 = scalar_lea.hbm %s1399_s6, 16 }
  0x49   :  { %p1043_p4 = scmp.ne.s32.totalorder %s1399_s6, %s1042_s17  ;;  %p1046_p5 = scmp.lt.u32.totalorder %s1042_s17, %s1399_s6 }
  0x4b   :  { %p1048_p6 = pnand %p1046_p5, %p1043_p4 }
  0x4d   :  { %1051 = shalt.err (!%p1048_p6)
}
  0x4e   :  { %s1052_s23 = scalar_lea.vmem %s78_s22, 16  ;;  %s1056_s1 = scalar_lea.vmem %s78_s22, 32 }
  0x4f   :  { %p1053_p7 = scmp.ne.s32.totalorder %s78_s22, %s1052_s23  ;;  %p1057_p8 = scmp.lt.s32.totalorder %s78_s22, %s78_s22 }
  0x50   :  { %p1058_p9 = scmp.lt.s32.totalorder %s1056_s1, %s1052_s23 }
  0x52   :  { %p1059_p10 = por %p1058_p9, %p1057_p8 }
  0x54   :  { %p1060_p11 = pnand %p1059_p10, %p1053_p7 }
  0x56   :  { %1063 = shalt.err (!%p1060_p11)
}
  0x57   :  { %80 = dma.hbm_to_vmem [thread:$0]  %s1399_s6, 16, %s78_s22, [#allocation9]  }
  0x58   :  { %s1127_s18 = smov [#allocation11]   ;;  %s1064_s29 = scalar_lea.hbm %s1401_s8, 16 }
  0x59   :  { %s89_s24 = sshll.u32 %s1127_s18, 4  ;;  %p1065_p12 = scmp.ne.s32.totalorder %s1401_s8, %s1064_s29  ;;  %s90_s24 = int_to_ptr.vmem [resolvable:$true] %s89_s24 }
  0x5a   :  { %p1068_p13 = scmp.lt.u32.totalorder %s1064_s29, %s1401_s8 }
  0x5c   :  { %p1070_p0 = pnand %p1068_p13, %p1065_p12 }
  0x5e   :  { %1073 = shalt.err (!%p1070_p0)
}
  0x5f   :  { %s1074_s14 = scalar_lea.vmem %s90_s24, 16  ;;  %s1078_s6 = scalar_lea.vmem %s90_s24, 32 }
  0x60   :  { %p1075_p1 = scmp.ne.s32.totalorder %s90_s24, %s1074_s14  ;;  %p1079_p2 = scmp.lt.s32.totalorder %s90_s24, %s90_s24 }
  0x61   :  { %p1080_p3 = scmp.lt.s32.totalorder %s1078_s6, %s1074_s14 }
  0x63   :  { %p1081_p4 = por %p1080_p3, %p1079_p2 }
  0x65   :  { %p1082_p5 = pnand %p1081_p4, %p1075_p1 }
  0x67   :  { %1085 = shalt.err (!%p1082_p5)
}
  0x68   :  { %92 = dma.hbm_to_vmem [thread:$0]  %s1401_s8, 16, %s90_s24, [#allocation12]  }
  0x69   :  { %1108 = dma.done.wait [#allocation3], 256  }
  0x6a   :  { %1109 = vsyncadd [#allocation3], 4294967040 }
  0x6b   :  { %1110 = dma.done.wait [#allocation6], 272  }
  0x6c   :  { %1111 = vsyncadd [#allocation6], 4294967024 }
  0x6d   :  { %1112 = dma.done.wait [#allocation9], 2064  }
  0x6e   :  { %1113 = vsyncadd [#allocation9], 4294965232 }
  0x6f   :  { %1114 = dma.done.wait [#allocation12], 16  }
  0x70   :  { %1115 = vsyncadd [#allocation12], 4294967280  ;;  %v1128_v0 = vmov 0.0   ;;  %vm145_vm0 = vcmask 1044480   ;;  %vm1129_vm1 = vmmov 0   ;;  %vm146_vm2 = vcmask 1045504  }
  0x71   :  { %845 = vmatprep.subr.bf16.mxu0 %v1128_v0  ;;  %849 = vmatprep.mubr.msk.bf16.mxu0 %vm1129_vm1, %v1128_v0  ;;  %v1130_v1 = vmov 65535   ;;  %v900_v3 = vld [vmem:[#allocation5] sm:$0xff]   ;;  %v901_v5 = vld [vmem:[#allocation5 + $0x8] sm:$0x3f]   ;;  %v116_v6 = vld [vmem:[#allocation2] sm:$0xff]  ;;  %vm141_vm3 = vcmask 220160   ;;  %v214_v58 = vlaneseq }
  0x72   :  { %v147_v2 = vsel %vm145_vm0, 4294967295, %v1130_v1  ;;  %846 = vmatpush3.bf16.msra.mxu0 %v900_v3  ;;  %v117_v7 = vld [vmem:[#allocation2 + $0x8] sm:$0xff]  ;;  %v905_v11 = vld [vmem:[%s1396_s3 + $0x14] ss:$8 sps:$4 sm:$0xff]   ;;  %v907_v13 = vld [vmem:[%s1396_s3 + $0x10] ss:$8 sps:$4 sm:$0xff]  }
  0x73   :  { %v148_v4 = vsel %vm146_vm2, %v147_v2, 0  ;;  %847 = vmatprep.subr.bf16.mxu0 %v1128_v0  ;;  %v902_v9 = vld [vmem:[%s1396_s3 + $0x4] ss:$8 sps:$4 sm:$0xff]   ;;  %v904_v10 = vld [vmem:[%s1396_s3] ss:$8 sps:$4 sm:$0xff]   ;;  %v118_v12 = vpack.c.bf16 %v117_v7, %v116_v6  ;;  %v1131_v26 = vmov 0  }
  0x74   :  { %v150_v8 = vand.u32 %v901_v5, %v148_v4  ;;  %304 = vmatprep.subr.bf16.mxu1 %v902_v9  ;;  %v908_v14 = vld [vmem:[%s1396_s3 + $0x24] ss:$8 sps:$4 sm:$0xff]   ;;  %v910_v15 = vld [vmem:[%s1396_s3 + $0x20] ss:$8 sps:$4 sm:$0xff]   ;;  %v911_v16 = vld [vmem:[%s1396_s3 + $0x34] ss:$8 sps:$4 sm:$0xff]   ;;  %336 = vmatprep.mubr.bf16.mxu1 %v1131_v26 }
  0x75   :  { %305 = vmatpush1.bf16.msra.mxu1 %v904_v10  ;;  %v913_v17 = vld [vmem:[%s1396_s3 + $0x30] ss:$8 sps:$4 sm:$0xff]   ;;  %v914_v18 = vld [vmem:[%s1396_s3 + $0x44] ss:$8 sps:$4 sm:$0xff]   ;;  %v916_v19 = vld [vmem:[%s1396_s3 + $0x40] ss:$8 sps:$4 sm:$0xff]  }
  0x76   :  { %848 = vmatpush3.bf16.msra.mxu0 %v150_v8  ;;  %306 = vmatprep.subr.bf16.mxu1 %v905_v11  ;;  %v917_v20 = vld [vmem:[%s1396_s3 + $0x54] ss:$8 sps:$4 sm:$0xff]   ;;  %v919_v21 = vld [vmem:[%s1396_s3 + $0x50] ss:$8 sps:$4 sm:$0xff]   ;;  %v920_v22 = vld [vmem:[%s1396_s3 + $0x64] ss:$8 sps:$4 sm:$0xff]  }
  0x77   :  { %v922_v23 = vld [vmem:[%s1396_s3 + $0x60] ss:$8 sps:$4 sm:$0xff]   ;;  %v923_v24 = vld [vmem:[%s1396_s3 + $0x74] ss:$8 sps:$4 sm:$0xff]   ;;  %v925_v25 = vld [vmem:[%s1396_s3 + $0x70] ss:$8 sps:$4 sm:$0xff]  }
  0x78   :  { %v926_v27 = vld [vmem:[#allocation8 + $0x40] sm:$0xff]   ;;  %v928_v29 = vld [vmem:[#allocation8 + $0x48] sm:$0xff]   ;;  %v930_v31 = vld [vmem:[#allocation8 + $0x50] sm:$0xff]   ;;  %v215_v59 = vshrl.u32 %v214_v58, 7  ;;  %vm686_vm4 = vcmask 523264   ;;  %vm731_vm5 = vcmask 72704  }
  0x79   :  { %850 = vmatmul.mubr.msk.bf16.vlgmr.msra.gmra.mrb[0].mxu0 %vm141_vm3, %v118_v12  ;;  %307 = vmatpush1.bf16.msra.mxu1 %v907_v13  ;;  %v927_v28 = vld [vmem:[#allocation8] sm:$0xff]   ;;  %v929_v30 = vld [vmem:[#allocation8 + $0x8] sm:$0xff]   ;;  %v931_v32 = vld [vmem:[#allocation8 + $0x10] sm:$0xff]  }
  0x7a   :  { %308 = vmatprep.subr.bf16.mxu1 %v908_v14  ;;  %809 = vmatprep.subr.bf16.mxu0 %v926_v27  ;;  %v932_v33 = vld [vmem:[#allocation8 + $0x58] sm:$0xff]   ;;  %v934_v35 = vld [vmem:[#allocation8 + $0x60] sm:$0xff]   ;;  %v936_v37 = vld [vmem:[#allocation8 + $0x68] sm:$0xff]   ;;  %v216_v60 = vsub.s32 0, %v215_v59  ;;  %v220_v62 = vsub.s32 1, %v215_v59 }
  0x7b   :  { %810 = vmatpush3.bf16.msra.mxu0 %v927_v28  ;;  %v933_v34 = vld [vmem:[#allocation8 + $0x18] sm:$0xff]   ;;  %v935_v36 = vld [vmem:[#allocation8 + $0x20] sm:$0xff]   ;;  %v937_v48 = vld [vmem:[#allocation8 + $0x28] sm:$0xff]  }
  0x7c   :  { %811 = vmatprep.subr.bf16.mxu0 %v928_v29  ;;  %v754_v38 = vld [vmem:[#allocation7] ss:$0 sm:$0xff]  ;;  %v938_v49 = vld [vmem:[#allocation8 + $0x70] sm:$0xff]   ;;  %v943_v54 = vld [vmem:[%s1400_s7 + $0x8] sm:$0xff]  }
  0x7d   :  { %309 = vmatpush1.bf16.msra.mxu1 %v910_v15  ;;  %v939_v50 = vld [vmem:[#allocation8 + $0x30] sm:$0xff]   ;;  %v940_v51 = vld [vmem:[#allocation8 + $0x78] sm:$0xff]  }
  0x7e   :  { %310 = vmatprep.subr.bf16.mxu1 %v911_v16  ;;  %v941_v52 = vld [vmem:[#allocation8 + $0x38] sm:$0xff]   ;;  %v944_v55 = vld [vmem:[%s1400_s7 + $0x10] sm:$0xff]   ;;  %v947_v16 = vld [vmem:[%s1400_s7 + $0x28] sm:$0xff]  }
  0x7f   :  { %812 = vmatpush3.bf16.msra.mxu0 %v929_v30  ;;  %v942_v53 = vld [vmem:[%s1400_s7] sm:$0xff]   ;;  %v945_v56 = vld [vmem:[%s1400_s7 + $0x18] sm:$0xff]  }
  0x80   :  { %813 = vmatprep.subr.bf16.mxu0 %v930_v31  ;;  %v946_v57 = vld [vmem:[%s1400_s7 + $0x20] sm:$0xff]  }
  0x81   :  { %311 = vmatpush1.bf16.msra.mxu1 %v913_v17  ;;  %v212_v61 = vld [vmem:[%s1397_s4] sm:$0x3]  ;;  %v948_v17 = vld [vmem:[%s1400_s7 + $0x30] sm:$0xff]  }
  0x82   :  { %312 = vmatprep.subr.bf16.mxu1 %v914_v18  ;;  %v217_v63 = vrot.slane %v212_v61, %v216_v60  ;;  %v221_v1 = vrot.slane %v212_v61, %v220_v62  ;;  %v949_v18 = vld [vmem:[%s1400_s7 + $0x38] sm:$0xff]  }
  0x83   :  { %814 = vmatpush3.bf16.msra.mxu0 %v931_v32 }
  0x84   :  { %815 = vmatprep.subr.bf16.mxu0 %v932_v33  ;;  %v952_v33 = vld [vmem:[%s1402_s9 + $0x10] sm:$0xff]  }
  0x85   :  { %313 = vmatpush1.bf16.msra.mxu1 %v916_v19  ;;  %v950_v19 = vld [vmem:[%s1402_s9] sm:$0xff]  }
  0x86   :  { %314 = vmatprep.subr.bf16.mxu1 %v917_v20  ;;  %v951_v20 = vld [vmem:[%s1402_s9 + $0x8] sm:$0xff]  }
  0x87   :  { %816 = vmatpush3.bf16.msra.mxu0 %v933_v34  ;;  %v953_v34 = vld [vmem:[%s1402_s9 + $0x18] sm:$0xff]   ;;  %s1132_s9 = smov [#allocation13]  }
  0x88   :  { %817 = vmatprep.subr.bf16.mxu0 %v934_v35  ;;  %v791_v35 = vld [vmem:[#allocation11] ss:$0 sm:$0xff]  ;;  %s739_s18 = sshll.u32 %s1132_s9, 4  ;;  %s740_s18 = int_to_ptr.vmem [resolvable:$true] %s739_s18 }
  0x89   :  { %315 = vmatpush1.bf16.msra.mxu1 %v919_v21  ;;  %s1086_s24 = scalar_lea.vmem %s740_s18, 256  ;;  %p1091_p7 = scmp.lt.s32.totalorder %s740_s18, %s740_s18 }
  0x8a   :  { %316 = vmatprep.subr.bf16.mxu1 %v920_v22  ;;  %v774_v22 = vld [vmem:[#allocation10] ss:$0 sm:$0xff]  ;;  %p1087_p6 = scmp.ne.s32.totalorder %s740_s18, %s1086_s24  ;;  %p1092_p8 = scmp.lt.s32.totalorder %s1086_s24, %s1086_s24 }
  0x8b   :  { %818 = vmatpush3.bf16.msra.mxu0 %v935_v36 }
  0x8c   :  { %819 = vmatprep.subr.bf16.mxu0 %v936_v37  ;;  %p1093_p9 = por %p1092_p8, %p1091_p7 }
  0x8d   :  { %317 = vmatpush1.bf16.msra.mxu1 %v922_v23 }
  0x8e   :  { %318 = vmatprep.subr.bf16.mxu1 %v923_v24  ;;  %p1094_p10 = pnand %p1093_p9, %p1087_p6 }
  0x8f   :  { %820 = vmatpush3.bf16.msra.mxu0 %v937_v48 }
  0x90   :  { %821 = vmatprep.subr.bf16.mxu0 %v938_v49 }
  0x91   :  { %319 = vmatpush1.bf16.msra.mxu1 %v925_v25 }
  0x92   :  { %853 = vmatprep.subr.bf16.mxu1 %v1128_v0 }
  0x93   :  { %822 = vmatpush3.bf16.msra.mxu0 %v939_v50 }
  0x94   :  { %823 = vmatprep.subr.bf16.mxu0 %v940_v51 }
  0x97   :  { %824 = vmatpush3.bf16.msra.mxu0 %v941_v52 }
  0x98   :  { %873 = vmatprep.subr.bf16.mxu0 %v1128_v0 }
 0x14c   :  { %v186_v39 = vpop.f32.mrb[0].mxu0 }
 0x14d   :  { %v187_v40 = vadd.f32 %v754_v38, %v186_v39  ;;  %v851_v41 = vpop.f32.mrb[1].mxu0 }
 0x14e   :  { %v189_v42 = vpop.f32.mrb[2].mxu0 }
 0x14f   :  { %v190_v43 = vadd.f32 %v754_v38, %v189_v42  ;;  %v852_v44 = vpop.f32.mrb[3].mxu0  ;;  %v193_v45 = vmax.f32 %v187_v40, 0.0 }
 0x151   :  { %v194_v46 = vmax.f32 %v190_v43, 0.0 }
 0x153   :  { %v195_v47 = vpack.c.bf16 %v194_v46, %v193_v45 }
 0x155   :  { %337 = vmatmul.mubr.bf16.vlgmr.msra.gmra.mrb[0].mxu1 %v195_v47 }
 0x156   :  { %869 = vmatprep.mubr.msk.bf16.mxu1 %vm1129_vm1, %v1128_v0  ;;  %854 = vmatpush3.bf16.msra.mxu1 %v942_v53 }
 0x157   :  { %855 = vmatprep.subr.bf16.mxu1 %v1128_v0 }
 0x15a   :  { %856 = vmatpush3.bf16.msra.mxu1 %v943_v54 }
 0x15b   :  { %857 = vmatprep.subr.bf16.mxu1 %v1128_v0 }
 0x15e   :  { %858 = vmatpush3.bf16.msra.mxu1 %v944_v55 }
 0x15f   :  { %859 = vmatprep.subr.bf16.mxu1 %v1128_v0 }
 0x162   :  { %860 = vmatpush3.bf16.msra.mxu1 %v945_v56 }
 0x163   :  { %861 = vmatprep.subr.bf16.mxu1 %v1128_v0 }
 0x166   :  { %862 = vmatpush3.bf16.msra.mxu1 %v946_v57 }
 0x167   :  { %863 = vmatprep.subr.bf16.mxu1 %v1128_v0 }
 0x16a   :  { %864 = vmatpush3.bf16.msra.mxu1 %v947_v16 }
 0x16b   :  { %865 = vmatprep.subr.bf16.mxu1 %v1128_v0 }
 0x16e   :  { %866 = vmatpush3.bf16.msra.mxu1 %v948_v17 }
 0x16f   :  { %867 = vmatprep.subr.bf16.mxu1 %v1128_v0 }
 0x172   :  { %868 = vmatpush3.bf16.msra.mxu1 %v949_v18 }
 0x228   :  { %v338_v2 = vpop.f32.mrb[0].mxu1 }
 0x229   :  { %v339_v3 = vadd.f32 %v338_v2, %v217_v63  ;;  %v340_v4 = vpop.f32.mrb[1].mxu1 }
 0x22a   :  { %v341_v5 = vadd.f32 %v340_v4, %v221_v1  ;;  %v342_v6 = vpop.f32.mrb[2].mxu1 }
 0x22b   :  { %v343_v7 = vadd.f32 %v342_v6, %v217_v63  ;;  %v344_v8 = vpop.f32.mrb[3].mxu1  ;;  %v347_v10 = vmax.f32 %v339_v3, 0.0 }
 0x22c   :  { %v345_v9 = vadd.f32 %v344_v8, %v221_v1  ;;  %v348_v12 = vmax.f32 %v341_v5, 0.0 }
 0x22d   :  { %v349_v11 = vmax.f32 %v343_v7, 0.0 }
 0x22e   :  { %v350_v13 = vmax.f32 %v345_v9, 0.0 }
 0x22f   :  { %v351_v14 = vpack.c.bf16 %v349_v11, %v347_v10 }
 0x230   :  { %v352_v15 = vpack.c.bf16 %v350_v13, %v348_v12 }
 0x232   :  { %520 = vmatprep.mubr.bf16.mxu0 %v352_v15 }
 0x233   :  { %521 = vmatmul.mubr.bf16.vlgmr.msra.gmra.mrb[4].mxu0 %v351_v14 }
 0x234   :  { %881 = vmatprep.mubr.msk.bf16.mxu0 %vm1129_vm1, %v1128_v0  ;;  %874 = vmatpush3.bf16.msra.mxu0 %v950_v19 }
 0x235   :  { %875 = vmatprep.subr.bf16.mxu0 %v1128_v0 }
 0x238   :  { %876 = vmatpush3.bf16.msra.mxu0 %v951_v20 }
 0x239   :  { %877 = vmatprep.subr.bf16.mxu0 %v1128_v0 }
 0x23c   :  { %878 = vmatpush3.bf16.msra.mxu0 %v952_v33 }
 0x23d   :  { %879 = vmatprep.subr.bf16.mxu0 %v1128_v0  ;;  %v800_v0 = vld [vmem:[%s1403_s10] ss:$0 sm:$0xff] }
 0x240   :  { %880 = vmatpush3.bf16.msra.mxu0 %v953_v34 }
 0x306   :  { %v825_v21 = vpop.f32.mrb[4].mxu0 }
 0x307   :  { %v826_v23 = vpop.f32.mrb[5].mxu0 }
 0x308   :  { %v827_v24 = vadd.f32 %v826_v23, %v825_v21  ;;  %v828_v25 = vpop.f32.mrb[6].mxu0 }
 0x309   :  { %v829_v26 = vpop.f32.mrb[7].mxu0 }
 0x30a   :  { %v523_v27 = vadd.f32 %v827_v24, %v774_v22  ;;  %v830_v28 = vadd.f32 %v829_v26, %v828_v25 }
 0x30c   :  { %v526_v29 = vadd.f32 %v830_v28, %v774_v22  ;;  %v529_v30 = vmax.f32 %v523_v27, 0.0 }
 0x30e   :  { %v530_v31 = vmax.f32 %v526_v29, 0.0 }
 0x310   :  { %v531_v32 = vpack.c.bf16 %v530_v31, %v529_v30 }
 0x312   :  { %870 = vmatmul.mubr.bf16.vlgmr.msra.gmra.mrb[4].mxu1 %v531_v32 }
 0x3e5   :  { %v637_v36 = vpop.f32.mrb[4].mxu1 }
 0x3e6   :  { %v638_v37 = vadd.f32 %v791_v35, %v637_v36  ;;  %v871_v38 = vpop.f32.mrb[5].mxu1 }
 0x3e7   :  { %v640_v39 = vpop.f32.mrb[6].mxu1 }
 0x3e8   :  { %v641_v40 = vadd.f32 %v791_v35, %v640_v39  ;;  %v872_v41 = vpop.f32.mrb[7].mxu1  ;;  %v644_v42 = vmax.f32 %v638_v37, 0.0 }
 0x3ea   :  { %v645_v43 = vmax.f32 %v641_v40, 0.0 }
 0x3ec   :  { %v646_v44 = vpack.c.bf16 %v645_v43, %v644_v42 }
 0x3ee   :  { %882 = vmatmul.mubr.msk.bf16.vlgmr.msra.gmra.mrb[8].mxu0 %vm686_vm4, %v646_v44 }
 0x4c1   :  { %v724_v45 = vpop.f32.mrb[8].mxu0 }
 0x4c2   :  { %v725_v46 = vadd.f32 %v800_v0, %v724_v45  ;;  %v883_v47 = vpop.f32.mrb[9].mxu0 }
 0x4c3   :  { %v727_v48 = vpop.f32.mrb[10].mxu0 }
 0x4c4   :  { %v728_v49 = vadd.f32 %v800_v0, %v727_v48  ;;  %v884_v50 = vpop.f32.mrb[11].mxu0  ;;  %732 = vst.msk [vmem:[#allocation13] sm:$0xff] %vm731_vm5, %v725_v46 }
 0x4c6   :  { %733 = vst.msk [vmem:[#allocation13 + $0x8] sm:$0xff] %vm731_vm5, %v728_v49 }
 0x4c7   :  { %1097 = shalt.err (!%p1094_p10)
}
 0x4c8   :  { %s1098_s26 = scalar_lea.hbm %s1404_s11, 256 }
 0x4c9   :  { %p1099_p11 = scmp.ne.s32.totalorder %s1404_s11, %s1098_s26  ;;  %p1102_p12 = scmp.lt.u32.totalorder %s1098_s26, %s1404_s11 }
 0x4cb   :  { %p1104_p13 = pnand %p1102_p12, %p1099_p11 }
 0x4cd   :  { %1107 = shalt.err (!%p1104_p13)
}
 0x4ce   :  { %745 = dma.vmem_to_hbm [thread:$0]  %s740_s18, 256, %s1404_s11, [#allocation4], %s1123_s5, %s1123_s5, %s1124_s27  }
 0x4cf   :  { %1116 = dma.done.wait [#allocation4], 256  }
 0x4d0   :  { %1117 = vsyncadd [#allocation4], 4294967040 }
 0x4d1   :  { %749 = vsyncpa [#allocation3], 1 }
 0x4d2   :  { %750 = vsyncpa [#allocation6], 1 }
 0x4d3   :  { %751 = vsyncpa [#allocation9], 1 }
 0x4d4   :  { %752 = vsyncpa [#allocation12], 1 }
 0x4d5   :  { %753 = vsyncpa [#allocation4], 1 }

</bundles_post_ra>
